<compile_context>
chip_gen: v7x
topology: tpu7x:2x2x1
jax: 0.10.0
libtpu: 0.0.40
codegen_flags: <defaults>
</compile_context>

<pallas_src>
import functools

import jax
import jax.numpy as jnp
from jax.experimental import pallas as pl
from jax.experimental.pallas import tpu as pltpu


def _round_up(x: int, m: int) -> int:
    return ((x + m - 1) // m) * m


def sigmoid_layer_kernel(x_ref, w_ref, bw_ref, o_ref):
    # x_ref : (TM, K)       MXU lhs tile
    # w_ref : (K, N_pad)    VMEM-resident weight (same block every grid step)
    # bw_ref: (1, N_pad)    precomputed bias @ weight row (f32)
    # o_ref : (TM, N_pad)   lane-dense (N_pad % 128 == 0) output tile
    z = jnp.dot(x_ref[...], w_ref[...],
                preferred_element_type=jnp.float32)      # MXU, f32 accumulate
    z = z - bw_ref[...]                                  # cheap length-N row add (VPU)
    o_ref[...] = jax.nn.sigmoid(z).astype(o_ref.dtype)   # EUP sigmoid, unmasked vst


@functools.partial(jax.jit, static_argnames=("block_batch", "mxu_dtype"))
def sigmoid_layer(x, bias, weight, *, block_batch: int = 256, mxu_dtype=None):
    """y = sigmoid((x - bias) @ weight), computed with a batch-tiled Pallas kernel."""
    batch, in_features = x.shape
    in_f_w, out_features = weight.shape
    assert in_f_w == in_features

    # --- bias hoist: (x - b) @ W == x @ W - (b @ W) -------------------------
    bw = (bias.astype(jnp.float32)[None, :] @ weight.astype(jnp.float32))  # (1, N)

    # --- lane-dense output: pad N to a multiple of 128 ----------------------
    lanes = 128
    n_pad = _round_up(max(out_features, 1), lanes)
    if n_pad != out_features:
        weight_p = jnp.pad(weight, ((0, 0), (0, n_pad - out_features)))
        bw_p = jnp.pad(bw, ((0, 0), (0, n_pad - out_features)))
    else:
        weight_p, bw_p = weight, bw

    # --- batch tiling: TM multiple of 8, weight stays VMEM-resident ---------
    tm = min(block_batch, _round_up(batch, 8))
    tm = _round_up(tm, 8)
    b_pad = _round_up(batch, tm)
    x_p = jnp.pad(x, ((0, b_pad - batch), (0, 0))) if b_pad != batch else x

    # Optional bf16 MXU operands (v6e/v7x); accumulation/epilogue remain f32.
    if mxu_dtype is not None:
        x_p = x_p.astype(mxu_dtype)
        weight_p = weight_p.astype(mxu_dtype)

    grid = (b_pad // tm,)
    out_p = pl.pallas_call(
        sigmoid_layer_kernel,
        out_shape=jax.ShapeDtypeStruct((b_pad, n_pad), jnp.float32),
        grid=grid,
        in_specs=[
            pl.BlockSpec((tm, in_features), lambda i: (i, 0)),    # x: tiled on batch
            pl.BlockSpec((in_features, n_pad), lambda i: (0, 0)),  # W: resident
            pl.BlockSpec((1, n_pad), lambda i: (0, 0)),            # bias@W: resident
        ],
        out_specs=pl.BlockSpec((tm, n_pad), lambda i: (i, 0)),
        compiler_params=pltpu.CompilerParams(
            dimension_semantics=("parallel",)),   # batch steps are independent
    )(x_p, weight_p, bw_p)

    # Strip batch/lane padding; return in the input dtype.
    return out_p[:batch, :out_features].astype(x.dtype)


def init_params(key, in_features, out_features):
    """Deterministic init mirroring the PyTorch module:
       - weight: xavier_uniform_ over (in_features, out_features)
       - bias:   truncated normal, std=0.5, mean=0.0
    """
    kw, kb = jax.random.split(key)
    limit = jnp.sqrt(6.0 / (in_features + out_features))
    weight = jax.random.uniform(
        kw, (in_features, out_features), minval=-limit, maxval=limit,
        dtype=jnp.float32)
    bias = 0.5 * jax.random.truncated_normal(
        kb, -2.0, 2.0, (in_features,), dtype=jnp.float32)
    return weight, bias


if __name__ == "__main__":
    key = jax.random.PRNGKey(0)
    k_x, k_p = jax.random.split(key)

    batch, in_features, out_features = 8, 32, 16
    x = jax.random.normal(k_x, (batch, in_features), dtype=jnp.float32)
    weight, bias = init_params(k_p, in_features, out_features)

    y = sigmoid_layer(x, bias, weight)
    y = jax.block_until_ready(y)

    # Reference check in plain JAX (original formulation, bias subtracted first).
    y_ref = jax.nn.sigmoid((x - bias[None, :]) @ weight)
    assert y.shape == (batch, out_features)
    assert jnp.allclose(y, y_ref, atol=1e-5, rtol=1e-5)

    print("KERNEL_OK")
</pallas_src>

<mosaic_0001>
module attributes {stable_mosaic.version = 11 : i64} {
  func.func @sigmoid_layer_kernel(%arg0: i32, %arg1: memref<8x32xf32, #tpu.memory_space<vmem>>, %arg2: memref<32x128xf32, #tpu.memory_space<vmem>>, %arg3: memref<1x128xf32, #tpu.memory_space<vmem>>, %arg4: memref<8x128xf32, #tpu.memory_space<vmem>>) attributes {dimension_semantics = [#tpu.dimension_semantics<parallel>], iteration_bounds = array<i64: 1>, scalar_prefetch = 0 : i64, scratch_operands = 0 : i64, tpu.core_type = #tpu.core_type<tc>, window_params = [{transform_indices = @transform_0, window_bounds = array<i64: 8, 32>}, {pipeline_mode = #tpu.pipeline_mode<synchronous>, transform_indices = @transform_1, window_bounds = array<i64: 32, 128>}, {pipeline_mode = #tpu.pipeline_mode<synchronous>, transform_indices = @transform_2, window_bounds = array<i64: 1, 128>}, {transform_indices = @transform_3, window_bounds = array<i64: 8, 128>}]} {
    %c0 = arith.constant 0 : index
    %c0_0 = arith.constant 0 : index
    %0 = vector.load %arg1[%c0, %c0_0] : memref<8x32xf32, #tpu.memory_space<vmem>>, vector<8x32xf32>
    %c0_1 = arith.constant 0 : index
    %c0_2 = arith.constant 0 : index
    %1 = vector.load %arg2[%c0_1, %c0_2] : memref<32x128xf32, #tpu.memory_space<vmem>>, vector<32x128xf32>
    %cst = arith.constant dense<0.000000e+00> : vector<8x128xf32>
    %2 = tpu.matmul %0, %1, %cst {dimension_numbers = #tpu.dot_dimension_numbers<[1], [0], [0], [1], [0, 0, 1, 1], [], []>} : vector<8x32xf32>, vector<32x128xf32>, vector<8x128xf32> -> vector<8x128xf32>
    %c0_3 = arith.constant 0 : index
    %c0_4 = arith.constant 0 : index
    %3 = vector.load %arg3[%c0_3, %c0_4] : memref<1x128xf32, #tpu.memory_space<vmem>>, vector<1x128xf32>
    %4 = vector.broadcast %3 : vector<1x128xf32> to vector<8x128xf32>
    %5 = arith.subf %2, %4 : vector<8x128xf32>
    %6 = arith.negf %5 : vector<8x128xf32>
    %7 = math.exp %6 : vector<8x128xf32>
    %cst_5 = arith.constant 1.000000e+00 : f32
    %8 = vector.broadcast %cst_5 : f32 to vector<8x128xf32>
    %9 = arith.addf %8, %7 : vector<8x128xf32>
    %10 = arith.divf %8, %9 : vector<8x128xf32>
    %c0_6 = arith.constant 0 : index
    %c0_7 = arith.constant 0 : index
    %11 = vector.load %arg4[%c0_6, %c0_7] : memref<8x128xf32, #tpu.memory_space<vmem>>, vector<8x128xf32>
    tpu.vector_store %arg4[%c0_6, %c0_7], %10 {strides = array<i32>} : memref<8x128xf32, #tpu.memory_space<vmem>>, vector<8x128xf32>,
    return
  }
  func.func @transform_0(%arg0: i32) -> (i32, i32) {
    %c0_i32 = arith.constant 0 : i32
    %c0_i32_0 = arith.constant 0 : i32
    return %arg0, %c0_i32 : i32, i32
  }
  func.func @transform_1(%arg0: i32) -> (i32, i32) {
    %c0_i32 = arith.constant 0 : i32
    %c0_i32_0 = arith.constant 0 : i32
    %c0_i32_1 = arith.constant 0 : i32
    return %c0_i32, %c0_i32_0 : i32, i32
  }
  func.func @transform_2(%arg0: i32) -> (i32, i32) {
    %c0_i32 = arith.constant 0 : i32
    %c0_i32_0 = arith.constant 0 : i32
    %c0_i32_1 = arith.constant 0 : i32
    return %c0_i32, %c0_i32_0 : i32, i32
  }
  func.func @transform_3(%arg0: i32) -> (i32, i32) {
    %c0_i32 = arith.constant 0 : i32
    %c0_i32_0 = arith.constant 0 : i32
    return %arg0, %c0_i32 : i32, i32
  }
}

</mosaic_0001>

<bundles_post_ra>
// kernel: sigmoid_layer.1
= control target key start
LH: loop header
LB: loop body
LE: loop exit
PB: predicated region body
PF: predicated region fallthrough
CT: control target
= control target key end

     0   :  { %v180_v3 = vmov 0.0|0.0   ;;  %vm181_vm0 = vmmov 0   ;;  %v182_v6 = vmov 0.0   ;;  %s234_s0 = inlined_call_operand.vmem [shape: f32[8,32], index: 0, kind: input, shape index: {}]   ;;  %s235_s1 = inlined_call_operand.vmem [shape: f32[32,128], index: 1, kind: input, shape index: {}]   ;;  %s236_s2 = inlined_call_operand.vmem [shape: f32[1,128], index: 2, kind: input, shape index: {}]   ;;  %s237_s3 = inlined_call_operand.hbm [shape: f32[8,128], index: 3, kind: output, shape index: {}]  }
   0x1   :  { %v16_v0 = vld [vmem:[%s235_s1] sm:$0xff]  ;;  %v17_v1 = vld [vmem:[%s235_s1 + $0x8] sm:$0xff]  ;;  %v18_v2 = vld [vmem:[%s235_s1 + $0x10] sm:$0xff]  ;;  %142 = vmatprep.subr.bf16.mxu0 %v180_v3  ;;  %139 = vmatprep.mubr.msk.f32.mxu0 %vm181_vm0, %v182_v6 }
   0x2   :  { %v143_v4 = vpack.c.bf16 %v17_v1, %v16_v0  ;;  %v19_v5 = vld [vmem:[%s235_s1 + $0x18] sm:$0xff] }
   0x3   :  { %8 = vsyncpa [#allocation3], 0  ;;  %v146_v7 = vpack.c.bf16 %v19_v5, %v18_v2  ;;  %v15_v8 = vld [vmem:[%s234_s0] sm:$0xff]  ;;  %vm20_vm1 = vcmask 261120   ;;  %s183_s1 = smov [#allocation2]  }
   0x4   :  { %144 = vmatpush3.bf16.msra.mxu0 %v143_v4  ;;  %v124_v9 = vld [vmem:[%s236_s2] ss:$0 sm:$0xff]  ;;  %s115_s24 = sshll.u32 %s183_s1, 4  ;;  %s116_s24 = int_to_ptr.vmem [resolvable:$true] %s115_s24 }
   0x5   :  { %145 = vmatprep.subr.bf16.mxu0 %v180_v3  ;;  %s156_s0 = scalar_lea.vmem %s116_s24, 128  ;;  %p161_p1 = scmp.lt.s32.totalorder %s116_s24, %s116_s24 }
   0x6   :  { %p157_p0 = scmp.ne.s32.totalorder %s116_s24, %s156_s0  ;;  %p162_p2 = scmp.lt.s32.totalorder %s156_s0, %s156_s0 }
   0x8   :  { %147 = vmatpush3.bf16.msra.mxu0 %v146_v7  ;;  %p163_p3 = por %p162_p2, %p161_p1 }
   0xa   :  { %p164_p4 = pnand %p163_p3, %p157_p0 }
   0xb   :  { %140 = vmatmul.mubr.msk.f32.vlgmr.msra.gmra.mrb[0].mxu0 %vm20_vm1, %v15_v8 }
  0xde   :  { %v90_v10 = vpop.f32.mrb[0].mxu0 }
  0xdf   :  { %v101_v11 = vsub.f32 %v90_v10, %v124_v9  ;;  %v141_v12 = vpop.f32.mrb[1].mxu0 }
  0xe1   :  { %v125_v13 = vmul.f32 -1.442695, %v101_v11 }
  0xe3   :  { %152 = vpow2.f32 %v125_v13 }
  0xed   :  { %v153_v14 = vpop.eup %152 }
  0xee   :  { %v105_v15 = vadd.f32 1.0, %v153_v14 }
  0xf0   :  { %154 = vrcp.f32 %v105_v15 }
  0xfa   :  { %v155_v16 = vpop.eup %154 }
  0xfb   :  { %108 = vst [vmem:[#allocation2] sm:$0xff] %v155_v16 }
  0xfc   :  { %167 = shalt.err (!%p164_p4)
}
  0xfd   :  { %s168_s26 = scalar_lea.hbm %s237_s3, 128 }
  0xfe   :  { %p169_p5 = scmp.ne.s32.totalorder %s237_s3, %s168_s26  ;;  %p172_p6 = scmp.lt.u32.totalorder %s168_s26, %s237_s3 }
 0x100   :  { %p174_p7 = pnand %p172_p6, %p169_p5 }
 0x102   :  { %177 = shalt.err (!%p174_p7)
}
 0x103   :  { %118 = dma.vmem_to_hbm [thread:$0]  %s116_s24, 128, %s237_s3, [#allocation3]  }
 0x104   :  { %178 = dma.done.wait [#allocation3], 128  }
 0x105   :  { %179 = vsyncadd [#allocation3], 4294967168 }
 0x106   :  { %122 = vsyncpa [#allocation3], 1 }

</bundles_post_ra>
